<compile_context>
chip_gen: v7x
topology: tpu7x:2x2x1
jax: 0.10.0
libtpu: 0.0.40
codegen_flags: <defaults>
</compile_context>

<pallas_src>
import math

import jax
import jax.numpy as jnp
import numpy as np
from jax.experimental import pallas as pl
from jax.experimental.pallas import tpu as pltpu


# ----------------------------------------------------------------------------
# Module configuration (mul, (l, parity), variance) and instructions
# ----------------------------------------------------------------------------
IN1 = [(4, (0, 1), 1.0), (4, (1, 1), 1.0)]
IN2 = [(1, (0, 1), 1.0), (1, (1, 1), 1.0)]
OUT = [(4, (0, 1), 1.0), (4, (1, 1), 1.0)]
INSTR = [
    (0, 0, 0, "uvu", True, 1.0),
    (1, 0, 1, "uvu", True, 1.0),
    (0, 1, 1, "uvu", True, 1.0),
    (1, 1, 0, "uvu", True, 1.0),
    (1, 1, 1, "uvu", True, 1.0),
]
NORMALIZATION = "component"

GROUP = 8  # batch rows packed per lane row (8 * 16 = 128 lanes)


def irreps_dim(irreps):
    return sum(mul * (2 * l + 1) for mul, (l, _p), _v in irreps)


def irreps_offsets(irreps):
    offs, o = [], 0
    for mul, (l, _p), _v in irreps:
        offs.append(o)
        o += mul * (2 * l + 1)
    return offs


def wigner_3j(l1, l2, l3):
    """Wigner-3j blocks for the (l1,l2,l3) triplets used by this instantiation
    (real spherical-harmonic basis, e3nn convention up to an overall sign)."""
    if (l1, l2, l3) == (0, 0, 0):
        return np.ones((1, 1, 1), np.float32)
    if (l1, l2, l3) == (1, 0, 1):
        return (np.eye(3, dtype=np.float32)[:, None, :] / math.sqrt(3))
    if (l1, l2, l3) == (0, 1, 1):
        return (np.eye(3, dtype=np.float32)[None, :, :] / math.sqrt(3))
    if (l1, l2, l3) == (1, 1, 0):
        return (np.eye(3, dtype=np.float32)[:, :, None] / math.sqrt(3))
    if (l1, l2, l3) == (1, 1, 1):
        eps = np.zeros((3, 3, 3), np.float32)
        for i, j, k in [(0, 1, 2), (1, 2, 0), (2, 0, 1)]:
            eps[i, j, k] = 1.0
            eps[j, i, k] = -1.0
        return eps / math.sqrt(6)
    raise NotImplementedError((l1, l2, l3))


def _path_constant(i1, i2, io, mode, path_weight):
    """alpha / c exactly as computed in the module's __init__."""
    in1_var = [v for _, _, v in IN1]
    in2_var = [v for _, _, v in IN2]
    out_var = [v for _, _, v in OUT]
    alpha = out_var[io] / sum(
        pw_ * in1_var[a] * in2_var[b]
        for a, b, c_, _, _, pw_ in INSTR
        if c_ == io
    )
    mul_1 = IN1[i1][0]
    mul_2 = IN2[i2][0]
    divisor = {
        "uvw": mul_1 * mul_2, "uvu": mul_2, "uvv": mul_1,
        "uuw": mul_1, "uuu": 1, "uvuv": 1,
    }[mode]
    return math.sqrt(alpha * path_weight / divisor)


def build_bilinear_tensor(ws_list):
    """Fold weights + wigner blocks + path constants into W[d1, d2, d_out]."""
    d1, d2, do = irreps_dim(IN1), irreps_dim(IN2), irreps_dim(OUT)
    off1, off2, offo = irreps_offsets(IN1), irreps_offsets(IN2), irreps_offsets(OUT)
    W = np.zeros((d1, d2, do), np.float32)
    wi = 0
    for (i1, i2, io, mode, weight, pw) in INSTR:
        assert mode == "uvu" and weight, "this instantiation uses weighted 'uvu' paths"
        mul1, (l1, _), _ = IN1[i1]
        mul2, (l2, _), _ = IN2[i2]
        mulo, (lo, _), _ = OUT[io]
        assert mul1 == mulo
        c = _path_constant(i1, i2, io, mode, pw)
        C = wigner_3j(l1, l2, lo) * math.sqrt(2 * lo + 1)  # component normalization
        w = np.asarray(ws_list[wi], np.float32)  # (mul1, mul2)
        wi += 1
        for u in range(mul1):
            for v in range(mul2):
                blk = c * w[u, v] * C
                r1 = off1[i1] + u * (2 * l1 + 1)
                r2 = off2[i2] + v * (2 * l2 + 1)
                ro = offo[io] + u * (2 * lo + 1)
                W[r1:r1 + 2 * l1 + 1, r2:r2 + 2 * l2 + 1, ro:ro + 2 * lo + 1] += blk
    return jnp.asarray(W)


def build_packed_operands(W, group=GROUP):
    """Build the lane-packed constant MXU operands.

    S[j]  : (group*d2, group*d1)  0/1 selection spreading x2[:, j] of each
            packed batch row across its 16-lane group.
    M[j]  : (group*d1, group*do)  block-diagonal weights, block g = W[:, j, :].
    """
    Wn = np.asarray(W, np.float32)
    d1, d2, do = Wn.shape
    S = np.zeros((d2, group * d2, group * d1), np.float32)
    M = np.zeros((d2, group * d1, group * do), np.float32)
    for j in range(d2):
        for g in range(group):
            S[j, g * d2 + j, g * d1:(g + 1) * d1] = 1.0
            M[j, g * d1:(g + 1) * d1, g * do:(g + 1) * do] = Wn[:, j, :]
    return jnp.asarray(S), jnp.asarray(M)


# ----------------------------------------------------------------------------
# Pallas kernel: lane-dense, per-j accumulating MXU matmuls.
#   x2s_j = x2p @ S[j]                (tbg, 128)   spread x2[:, j] over groups
#   acc  += (x1p * x2s_j) @ M[j]      (tbg, 128)   block-diagonal weight matmul
# ----------------------------------------------------------------------------
def _wtp_kernel(x1_ref, x2_ref, s_ref, m_ref, o_ref):
    x1 = x1_ref[...]                       # (tbg, group*d1) = (tbg, 128)
    x2 = x2_ref[...]                       # (tbg, group*d2) = (tbg, 32)
    d2 = s_ref.shape[0]                    # static (4)
    acc = None
    for j in range(d2):                    # static unroll, MXU far from saturated
        x2s = jnp.dot(x2, s_ref[j], preferred_element_type=jnp.float32)
        t = jnp.dot(x1 * x2s, m_ref[j], preferred_element_type=jnp.float32)
        acc = t if acc is None else acc + t
    o_ref[...] = acc.astype(o_ref.dtype)


def weighted_tensor_product(x1, x2, W, *, tb_rows=8192):
    """out[z, k] = sum_{i,j} W[i,j,k] * x1[z,i] * x2[z,j]  (lane-packed kernel)."""
    B, d1 = x1.shape
    _, d2 = x2.shape
    do = W.shape[2]
    g = GROUP

    # Fast path requires B % 8 == 0 (free reshapes).  Otherwise pad (extra HBM
    # pass) — not hit in the demo.
    Bp = pl.cdiv(B, g) * g
    if Bp != B:
        x1 = jnp.pad(x1, ((0, Bp - B), (0, 0)))
        x2 = jnp.pad(x2, ((0, Bp - B), (0, 0)))
    Bg = Bp // g

    # Free, HBM-contiguous reshapes: 8 consecutive batch rows per lane row.
    x1p = x1.reshape(Bg, g * d1)          # (Bg, 128)
    x2p = x2.reshape(Bg, g * d2)          # (Bg, 32)

    S, M = build_packed_operands(W, g)    # (d2,32,128), (d2,128,128)

    # Large batch tile (amortize ~0.35us/step overhead); multiple of 8 packed
    # rows; no artificial B//2 cap.  Ragged tails are masked by Pallas.
    tbg = max(8, (max(tb_rows // g, 8) // 8) * 8)
    if tbg >= Bg:
        tbg = Bg                          # single step; block == full dim is legal
    n_steps = pl.cdiv(Bg, tbg)

    cost = pl.CostEstimate(
        flops=2 * Bg * d2 * (g * d2 * g * d1 + g * d1 * g * do),
        transcendentals=0,
        bytes_accessed=4 * (Bg * g * (d1 + d2 + do) + S.size + M.size),
    )

    out_p = pl.pallas_call(
        _wtp_kernel,
        out_shape=jax.ShapeDtypeStruct((Bg, g * do), x1.dtype),
        grid_spec=pltpu.PrefetchScalarGridSpec(
            num_scalar_prefetch=0,
            grid=(n_steps,),
            in_specs=[
                pl.BlockSpec((tbg, g * d1), lambda b: (b, 0)),
                pl.BlockSpec((tbg, g * d2), lambda b: (b, 0)),
                # loop-invariant weight operands: constant index_map keeps them
                # resident in VMEM across all grid steps.
                pl.BlockSpec((d2, g * d2, g * d1), lambda b: (0, 0, 0)),
                pl.BlockSpec((d2, g * d1, g * do), lambda b: (0, 0, 0)),
            ],
            out_specs=pl.BlockSpec((tbg, g * do), lambda b: (b, 0)),
        ),
        compiler_params=pltpu.CompilerParams(
            dimension_semantics=("parallel",),
            # VMEM footprint ~3 MB at tbg=1024; raise vmem_limit_bytes only if
            # tb_rows is pushed past ~64K on v5e (16 MiB default scoped limit).
        ),
        cost_estimate=cost,
    )(x1p, x2p, S, M)

    out = out_p.reshape(Bp, do)
    if Bp != B:
        out = out[:B]
    return out


# ----------------------------------------------------------------------------
# Pure-JAX reference mirroring the module's generated einsum code ('uvu' path)
# ----------------------------------------------------------------------------
def reference_forward(x1, x2, ws_list):
    B = x1.shape[0]
    off1, off2, offo = irreps_offsets(IN1), irreps_offsets(IN2), irreps_offsets(OUT)
    out = jnp.zeros((B, irreps_dim(OUT)), jnp.float32)
    wi = 0
    for (i1, i2, io, mode, weight, pw) in INSTR:
        mul1, (l1, _), _ = IN1[i1]
        mul2, (l2, _), _ = IN2[i2]
        mulo, (lo, _), _ = OUT[io]
        d1i, d2i, doi = mul1 * (2 * l1 + 1), mul2 * (2 * l2 + 1), mulo * (2 * lo + 1)
        s1 = x1[:, off1[i1]:off1[i1] + d1i].reshape(B, mul1, 2 * l1 + 1)
        s2 = x2[:, off2[i2]:off2[i2] + d2i].reshape(B, mul2, 2 * l2 + 1)
        c = _path_constant(i1, i2, io, mode, pw)
        C = jnp.asarray(wigner_3j(l1, l2, lo) * math.sqrt(2 * lo + 1))
        w = ws_list[wi]
        wi += 1
        contrib = c * jnp.einsum("uv,ijk,zui,zvj->zuk", w, C, s1, s2).reshape(B, doi)
        out = out.at[:, offo[io]:offo[io] + doi].add(contrib)
    return out


if __name__ == "__main__":
    key = jax.random.PRNGKey(0)
    keys = jax.random.split(key, 2 + len(INSTR))
    B = 512                                # small demo batch (multiple of 8)
    d1, d2, do = irreps_dim(IN1), irreps_dim(IN2), irreps_dim(OUT)

    x1 = jax.random.normal(keys[0], (B, d1), jnp.float32)
    x2 = jax.random.normal(keys[1], (B, d2), jnp.float32)

    # internal weights: one (mul_1, mul_2) tensor per weighted 'uvu' instruction
    ws = [
        jax.random.normal(keys[2 + n], (IN1[i1][0], IN2[i2][0]), jnp.float32)
        for n, (i1, i2, *_rest) in enumerate(INSTR)
    ]

    W = build_bilinear_tensor(ws)
    ref = reference_forward(x1, x2, ws)

    # Default tile: single grid step covers the whole (small) batch.
    out = jax.block_until_ready(weighted_tensor_product(x1, x2, W))
    assert out.shape == (B, do)
    np.testing.assert_allclose(np.asarray(out), np.asarray(ref), rtol=1e-4, atol=1e-5)

    # Also exercise the multi-step pipelined path (grid of 4 tiles).
    out_tiled = jax.block_until_ready(weighted_tensor_product(x1, x2, W, tb_rows=128))
    np.testing.assert_allclose(np.asarray(out_tiled), np.asarray(ref), rtol=1e-4, atol=1e-5)

    print("KERNEL_OK")
</pallas_src>

<mosaic_0001>
module attributes {stable_mosaic.version = 11 : i64} {
  func.func @_wtp_kernel(%arg0: i32, %arg1: memref<64x128xf32, #tpu.memory_space<vmem>>, %arg2: memref<64x32xf32, #tpu.memory_space<vmem>>, %arg3: memref<4x32x128xf32, #tpu.memory_space<vmem>>, %arg4: memref<4x128x128xf32, #tpu.memory_space<vmem>>, %arg5: memref<64x128xf32, #tpu.memory_space<vmem>>) attributes {dimension_semantics = [#tpu.dimension_semantics<parallel>], iteration_bounds = array<i64: 1>, scalar_prefetch = 0 : i64, scratch_operands = 0 : i64, tpu.core_type = #tpu.core_type<tc>, window_params = [{transform_indices = @transform_0, window_bounds = array<i64: 64, 128>}, {transform_indices = @transform_1, window_bounds = array<i64: 64, 32>}, {pipeline_mode = #tpu.pipeline_mode<synchronous>, transform_indices = @transform_2, window_bounds = array<i64: 4, 32, 128>}, {pipeline_mode = #tpu.pipeline_mode<synchronous>, transform_indices = @transform_3, window_bounds = array<i64: 4, 128, 128>}, {transform_indices = @transform_4, window_bounds = array<i64: 64, 128>}]} {
    %c0 = arith.constant 0 : index
    %c0_0 = arith.constant 0 : index
    %0 = vector.load %arg1[%c0, %c0_0] : memref<64x128xf32, #tpu.memory_space<vmem>>, vector<64x128xf32>
    %c0_1 = arith.constant 0 : index
    %c0_2 = arith.constant 0 : index
    %1 = vector.load %arg2[%c0_1, %c0_2] : memref<64x32xf32, #tpu.memory_space<vmem>>, vector<64x32xf32>
    %c0_3 = arith.constant 0 : index
    %c0_4 = arith.constant 0 : index
    %c0_5 = arith.constant 0 : index
    %2 = vector.load %arg3[%c0_3, %c0_4, %c0_5] : memref<4x32x128xf32, #tpu.memory_space<vmem>>, vector<1x32x128xf32>
    %3 = vector.shape_cast %2 : vector<1x32x128xf32> to vector<32x128xf32>
    %cst = arith.constant dense<0.000000e+00> : vector<64x128xf32>
    %4 = tpu.matmul %1, %3, %cst {dimension_numbers = #tpu.dot_dimension_numbers<[1], [0], [0], [1], [0, 0, 1, 1], [], []>} : vector<64x32xf32>, vector<32x128xf32>, vector<64x128xf32> -> vector<64x128xf32>
    %5 = arith.mulf %0, %4 : vector<64x128xf32>
    %c0_6 = arith.constant 0 : index
    %c0_7 = arith.constant 0 : index
    %c0_8 = arith.constant 0 : index
    %6 = vector.load %arg4[%c0_6, %c0_7, %c0_8] : memref<4x128x128xf32, #tpu.memory_space<vmem>>, vector<1x128x128xf32>
    %7 = vector.shape_cast %6 : vector<1x128x128xf32> to vector<128x128xf32>
    %cst_9 = arith.constant dense<0.000000e+00> : vector<64x128xf32>
    %8 = tpu.matmul %5, %7, %cst_9 {dimension_numbers = #tpu.dot_dimension_numbers<[1], [0], [0], [1], [0, 0, 1, 1], [], []>} : vector<64x128xf32>, vector<128x128xf32>, vector<64x128xf32> -> vector<64x128xf32>
    %c1 = arith.constant 1 : index
    %c0_10 = arith.constant 0 : index
    %c0_11 = arith.constant 0 : index
    %9 = vector.load %arg3[%c1, %c0_10, %c0_11] : memref<4x32x128xf32, #tpu.memory_space<vmem>>, vector<1x32x128xf32>
    %10 = vector.shape_cast %9 : vector<1x32x128xf32> to vector<32x128xf32>
    %cst_12 = arith.constant dense<0.000000e+00> : vector<64x128xf32>
    %11 = tpu.matmul %1, %10, %cst_12 {dimension_numbers = #tpu.dot_dimension_numbers<[1], [0], [0], [1], [0, 0, 1, 1], [], []>} : vector<64x32xf32>, vector<32x128xf32>, vector<64x128xf32> -> vector<64x128xf32>
    %12 = arith.mulf %0, %11 : vector<64x128xf32>
    %c1_13 = arith.constant 1 : index
    %c0_14 = arith.constant 0 : index
    %c0_15 = arith.constant 0 : index
    %13 = vector.load %arg4[%c1_13, %c0_14, %c0_15] : memref<4x128x128xf32, #tpu.memory_space<vmem>>, vector<1x128x128xf32>
    %14 = vector.shape_cast %13 : vector<1x128x128xf32> to vector<128x128xf32>
    %cst_16 = arith.constant dense<0.000000e+00> : vector<64x128xf32>
    %15 = tpu.matmul %12, %14, %cst_16 {dimension_numbers = #tpu.dot_dimension_numbers<[1], [0], [0], [1], [0, 0, 1, 1], [], []>} : vector<64x128xf32>, vector<128x128xf32>, vector<64x128xf32> -> vector<64x128xf32>
    %16 = arith.addf %8, %15 : vector<64x128xf32>
    %c2 = arith.constant 2 : index
    %c0_17 = arith.constant 0 : index
    %c0_18 = arith.constant 0 : index
    %17 = vector.load %arg3[%c2, %c0_17, %c0_18] : memref<4x32x128xf32, #tpu.memory_space<vmem>>, vector<1x32x128xf32>
    %18 = vector.shape_cast %17 : vector<1x32x128xf32> to vector<32x128xf32>
    %cst_19 = arith.constant dense<0.000000e+00> : vector<64x128xf32>
    %19 = tpu.matmul %1, %18, %cst_19 {dimension_numbers = #tpu.dot_dimension_numbers<[1], [0], [0], [1], [0, 0, 1, 1], [], []>} : vector<64x32xf32>, vector<32x128xf32>, vector<64x128xf32> -> vector<64x128xf32>
    %20 = arith.mulf %0, %19 : vector<64x128xf32>
    %c2_20 = arith.constant 2 : index
    %c0_21 = arith.constant 0 : index
    %c0_22 = arith.constant 0 : index
    %21 = vector.load %arg4[%c2_20, %c0_21, %c0_22] : memref<4x128x128xf32, #tpu.memory_space<vmem>>, vector<1x128x128xf32>
    %22 = vector.shape_cast %21 : vector<1x128x128xf32> to vector<128x128xf32>
    %cst_23 = arith.constant dense<0.000000e+00> : vector<64x128xf32>
    %23 = tpu.matmul %20, %22, %cst_23 {dimension_numbers = #tpu.dot_dimension_numbers<[1], [0], [0], [1], [0, 0, 1, 1], [], []>} : vector<64x128xf32>, vector<128x128xf32>, vector<64x128xf32> -> vector<64x128xf32>
    %24 = arith.addf %16, %23 : vector<64x128xf32>
    %c3 = arith.constant 3 : index
    %c0_24 = arith.constant 0 : index
    %c0_25 = arith.constant 0 : index
    %25 = vector.load %arg3[%c3, %c0_24, %c0_25] : memref<4x32x128xf32, #tpu.memory_space<vmem>>, vector<1x32x128xf32>
    %26 = vector.shape_cast %25 : vector<1x32x128xf32> to vector<32x128xf32>
    %cst_26 = arith.constant dense<0.000000e+00> : vector<64x128xf32>
    %27 = tpu.matmul %1, %26, %cst_26 {dimension_numbers = #tpu.dot_dimension_numbers<[1], [0], [0], [1], [0, 0, 1, 1], [], []>} : vector<64x32xf32>, vector<32x128xf32>, vector<64x128xf32> -> vector<64x128xf32>
    %28 = arith.mulf %0, %27 : vector<64x128xf32>
    %c3_27 = arith.constant 3 : index
    %c0_28 = arith.constant 0 : index
    %c0_29 = arith.constant 0 : index
    %29 = vector.load %arg4[%c3_27, %c0_28, %c0_29] : memref<4x128x128xf32, #tpu.memory_space<vmem>>, vector<1x128x128xf32>
    %30 = vector.shape_cast %29 : vector<1x128x128xf32> to vector<128x128xf32>
    %cst_30 = arith.constant dense<0.000000e+00> : vector<64x128xf32>
    %31 = tpu.matmul %28, %30, %cst_30 {dimension_numbers = #tpu.dot_dimension_numbers<[1], [0], [0], [1], [0, 0, 1, 1], [], []>} : vector<64x128xf32>, vector<128x128xf32>, vector<64x128xf32> -> vector<64x128xf32>
    %32 = arith.addf %24, %31 : vector<64x128xf32>
    %c0_31 = arith.constant 0 : index
    %c0_32 = arith.constant 0 : index
    %33 = vector.load %arg5[%c0_31, %c0_32] : memref<64x128xf32, #tpu.memory_space<vmem>>, vector<64x128xf32>
    tpu.vector_store %arg5[%c0_31, %c0_32], %32 {strides = array<i32>} : memref<64x128xf32, #tpu.memory_space<vmem>>, vector<64x128xf32>,
    return
  }
  func.func @transform_0(%arg0: i32) -> (i32, i32) {
    %c0_i32 = arith.constant 0 : i32
    %c0_i32_0 = arith.constant 0 : i32
    return %arg0, %c0_i32 : i32, i32
  }
  func.func @transform_1(%arg0: i32) -> (i32, i32) {
    %c0_i32 = arith.constant 0 : i32
    %c0_i32_0 = arith.constant 0 : i32
    return %arg0, %c0_i32 : i32, i32
  }
  func.func @transform_2(%arg0: i32) -> (i32, i32, i32) {
    %c0_i32 = arith.constant 0 : i32
    %c0_i32_0 = arith.constant 0 : i32
    %c0_i32_1 = arith.constant 0 : i32
    %c0_i32_2 = arith.constant 0 : i32
    return %c0_i32, %c0_i32_0, %c0_i32_1 : i32, i32, i32
  }
  func.func @transform_3(%arg0: i32) -> (i32, i32, i32) {
    %c0_i32 = arith.constant 0 : i32
    %c0_i32_0 = arith.constant 0 : i32
    %c0_i32_1 = arith.constant 0 : i32
    %c0_i32_2 = arith.constant 0 : i32
    return %c0_i32, %c0_i32_0, %c0_i32_1 : i32, i32, i32
  }
  func.func @transform_4(%arg0: i32) -> (i32, i32) {
    %c0_i32 = arith.constant 0 : i32
    %c0_i32_0 = arith.constant 0 : i32
    return %arg0, %c0_i32 : i32, i32
  }
}

</mosaic_0001>

<bundles_post_ra>
// kernel: tpu_custom_call.1
= control target key start
LH: loop header
LB: loop body
LE: loop exit
PB: predicated region body
PF: predicated region fallthrough
CT: control target
= control target key end

     0   :  { %9 = vsyncpa [#allocation3], 0  ;;  %s2059_s0 = inlined_call_operand.vmem [shape: f32[64,128], index: 0, kind: input, shape index: {}]   ;;  %s2060_s1 = inlined_call_operand.vmem [shape: f32[64,32], index: 1, kind: input, shape index: {}]   ;;  %s2061_s2 = inlined_call_operand.hbm [shape: f32[4,32,128], index: 2, kind: input, shape index: {}]   ;;  %s2062_s3 = inlined_call_operand.hbm [shape: f32[4,128,128], index: 3, kind: input, shape index: {}]   ;;  %s2063_s4 = inlined_call_operand.hbm [shape: f32[64,128], index: 4, kind: output, shape index: {}]  }
   0x1   :  { %10 = vsyncpa [#allocation6], 0 }
   0x2   :  { %11 = vsyncpa [#allocation4], 0  ;;  %s1780_s15 = smov [#allocation2]   ;;  %s1708_s19 = scalar_lea.hbm %s2061_s2, 2048 }
   0x3   :  { %s21_s16 = sshll.u32 %s1780_s15, 4  ;;  %p1709_p0 = scmp.ne.s32.totalorder %s2061_s2, %s1708_s19  ;;  %s22_s16 = int_to_ptr.vmem [resolvable:$true] %s21_s16 }
   0x4   :  { %p1712_p1 = scmp.lt.u32.totalorder %s1708_s19, %s2061_s2 }
   0x6   :  { %p1714_p2 = pnand %p1712_p1, %p1709_p0 }
   0x8   :  { %1717 = shalt.err (!%p1714_p2)
}
   0x9   :  { %s1718_s24 = scalar_lea.vmem %s22_s16, 2048  ;;  %p1723_p4 = scmp.lt.s32.totalorder %s22_s16, %s22_s16 }
   0xa   :  { %p1719_p3 = scmp.ne.s32.totalorder %s22_s16, %s1718_s24  ;;  %p1724_p5 = scmp.lt.s32.totalorder %s1718_s24, %s1718_s24 }
   0xc   :  { %p1725_p6 = por %p1724_p5, %p1723_p4 }
   0xe   :  { %p1726_p7 = pnand %p1725_p6, %p1719_p3 }
  0x10   :  { %1729 = shalt.err (!%p1726_p7)
}
  0x11   :  { %s1781_s25 = smov 128   ;;  %s1782_s26 = smov 8  }
  0x12   :  { %27 = dma.hbm_to_vmem [thread:$0]  %s2061_s2, 2048, %s22_s16, [#allocation3], %s1781_s25, %s1781_s25, %s1782_s26  }
  0x13   :  { %s1783_s29 = smov [#allocation5]   ;;  %s1730_s7 = scalar_lea.hbm %s2062_s3, 8192 }
  0x14   :  { %s33_s30 = sshll.u32 %s1783_s29, 4  ;;  %p1731_p8 = scmp.ne.s32.totalorder %s2062_s3, %s1730_s7  ;;  %s34_s30 = int_to_ptr.vmem [resolvable:$true] %s33_s30 }
  0x15   :  { %p1734_p9 = scmp.lt.u32.totalorder %s1730_s7, %s2062_s3 }
  0x17   :  { %p1736_p10 = pnand %p1734_p9, %p1731_p8 }
  0x19   :  { %1739 = shalt.err (!%p1736_p10)
}
  0x1a   :  { %s1740_s12 = scalar_lea.vmem %s34_s30, 8192  ;;  %p1745_p12 = scmp.lt.s32.totalorder %s34_s30, %s34_s30 }
  0x1b   :  { %p1741_p11 = scmp.ne.s32.totalorder %s34_s30, %s1740_s12  ;;  %p1746_p13 = scmp.lt.s32.totalorder %s1740_s12, %s1740_s12 }
  0x1d   :  { %p1747_p0 = por %p1746_p13, %p1745_p12 }
  0x1f   :  { %p1748_p1 = pnand %p1747_p0, %p1741_p11 }
  0x21   :  { %1751 = shalt.err (!%p1748_p1)
}
  0x22   :  { %39 = dma.hbm_to_vmem [thread:$0]  %s2062_s3, 8192, %s34_s30, [#allocation6], %s1781_s25, %s1781_s25, %s1782_s26  }
  0x23   :  { %1774 = dma.done.wait [#allocation3], 2048  }
  0x24   :  { %1775 = vsyncadd [#allocation3], 4294965248 }
  0x25   :  { %1776 = dma.done.wait [#allocation6], 8192  }
  0x26   :  { %1777 = vsyncadd [#allocation6], 4294959104  ;;  %vm66_vm0 = vcmask 261120   ;;  %v62_v0 = vld [vmem:[#allocation2] sm:$0xff]  ;;  %v63_v1 = vld [vmem:[#allocation2 + $0x8] sm:$0xff] }
  0x27   :  { %v64_v2 = vld [vmem:[#allocation2 + $0x10] sm:$0xff]  ;;  %v1519_v3 = vpack.c.bf16 %v63_v1, %v62_v0  ;;  %v65_v4 = vld [vmem:[#allocation2 + $0x18] sm:$0xff]  ;;  %v1843_v5 = vld [vmem:[%s2060_s1] sm:$0xff] }
  0x28   :  { %v1523_v6 = vpack.c.bf16 %v65_v4, %v64_v2  ;;  %1271 = vmatprep.mubr.msk.f32.mxu1 %vm66_vm0, %v1843_v5  ;;  %v221_v7 = vld [vmem:[#allocation2 + $0x20] sm:$0xff]  ;;  %v222_v8 = vld [vmem:[#allocation2 + $0x28] sm:$0xff]  ;;  %v223_v10 = vld [vmem:[#allocation2 + $0x30] sm:$0xff] }
  0x29   :  { %1520 = vmatprep.subr.bf16.mxu1 %v1519_v3  ;;  %v1527_v9 = vpack.c.bf16 %v222_v8, %v221_v7  ;;  %v204_v11 = vld [vmem:[#allocation5] sm:$0xff]  ;;  %v205_v12 = vld [vmem:[#allocation5 + $0x8] sm:$0xff]  ;;  %v224_v13 = vld [vmem:[#allocation2 + $0x38] sm:$0xff] }
  0x2a   :  { %1522 = vmatpush3.bf16.msra.mxu1 %v1519_v3  ;;  %v1567_v14 = vpack.c.bf16 %v205_v12, %v204_v11  ;;  %v206_v15 = vld [vmem:[#allocation5 + $0x10] sm:$0xff]  ;;  %v207_v16 = vld [vmem:[#allocation5 + $0x18] sm:$0xff]  ;;  %v208_v18 = vld [vmem:[#allocation5 + $0x20] sm:$0xff]  ;;  %v1531_v22 = vpack.c.bf16 %v224_v13, %v223_v10 }
  0x2b   :  { %1524 = vmatprep.subr.bf16.mxu1 %v1523_v6  ;;  %v1571_v17 = vpack.c.bf16 %v207_v16, %v206_v15  ;;  %v209_v19 = vld [vmem:[#allocation5 + $0x28] sm:$0xff]  ;;  %v1855_v21 = vld [vmem:[%s2060_s1 + $0x10] sm:$0xff]  ;;  %v339_v24 = vld [vmem:[#allocation5 + $0x80] sm:$0xff] }
  0x2c   :  { %v1850_v20 = vld [vmem:[%s2060_s1 + $0x8] sm:$0xff]  ;;  %1568 = vmatprep.subr.bf16.mxu0 %v1567_v14  ;;  %v1575_v23 = vpack.c.bf16 %v209_v19, %v208_v18  ;;  %v210_v26 = vld [vmem:[#allocation5 + $0x30] sm:$0xff]  ;;  %v211_v27 = vld [vmem:[#allocation5 + $0x38] sm:$0xff] }
  0x2d   :  { %1570 = vmatpush3.bf16.msra.mxu0 %v1567_v14  ;;  %v340_v25 = vld [vmem:[#allocation5 + $0x88] sm:$0xff]  ;;  %v1864_v28 = vld [vmem:[%s2060_s1 + $0x18] sm:$0xff]  ;;  %v1869_v29 = vld [vmem:[%s2060_s1 + $0x20] sm:$0xff]  ;;  %v1579_v31 = vpack.c.bf16 %v211_v27, %v210_v26 }
  0x2e   :  { %1526 = vmatpush3.bf16.msra.mxu1 %v1523_v6  ;;  %1572 = vmatprep.subr.bf16.mxu0 %v1571_v17  ;;  %v1535_v30 = vpack.c.bf16 %v340_v25, %v339_v24  ;;  %v212_v32 = vld [vmem:[#allocation5 + $0x40] sm:$0xff]  ;;  %v213_v33 = vld [vmem:[#allocation5 + $0x48] sm:$0xff]  ;;  %v1883_v35 = vld [vmem:[%s2060_s1 + $0x30] sm:$0xff] }
  0x2f   :  { %1528 = vmatprep.subr.bf16.mxu1 %v1527_v9  ;;  %v1878_v34 = vld [vmem:[%s2060_s1 + $0x28] sm:$0xff]  ;;  %v1583_v36 = vpack.c.bf16 %v213_v33, %v212_v32  ;;  %v214_v37 = vld [vmem:[#allocation5 + $0x50] sm:$0xff]  ;;  %v215_v38 = vld [vmem:[#allocation5 + $0x58] sm:$0xff] }
  0x30   :  { %v1892_v39 = vld [vmem:[%s2060_s1 + $0x38] sm:$0xff]  ;;  %v341_v40 = vld [vmem:[#allocation5 + $0x90] sm:$0xff]  ;;  %v1587_v42 = vpack.c.bf16 %v215_v38, %v214_v37  ;;  %v216_v43 = vld [vmem:[#allocation5 + $0x60] sm:$0xff] }
  0x31   :  { %1272 = vmatmul.mubr.msk.f32.vlgmr.msra.gmra.mrb[0].mxu1 %vm66_vm0, %v1850_v20  ;;  %1574 = vmatpush3.bf16.msra.mxu0 %v1571_v17  ;;  %v342_v41 = vld [vmem:[#allocation5 + $0x98] sm:$0xff]  ;;  %v217_v44 = vld [vmem:[#allocation5 + $0x68] sm:$0xff]  ;;  %v343_v46 = vld [vmem:[#allocation5 + $0xa0] sm:$0xff] }
  0x32   :  { %1530 = vmatpush3.bf16.msra.mxu1 %v1527_v9  ;;  %1274 = vmatprep.mubr.msk.f32.mxu1 %vm66_vm0, %v1855_v21  ;;  %v1539_v45 = vpack.c.bf16 %v342_v41, %v341_v40  ;;  %v344_v47 = vld [vmem:[#allocation5 + $0xa8] sm:$0xff]  ;;  %v1591_v48 = vpack.c.bf16 %v217_v44, %v216_v43  ;;  %v345_v50 = vld [vmem:[#allocation5 + $0xb0] sm:$0xff]  ;;  %v346_v51 = vld [vmem:[#allocation5 + $0xb8] sm:$0xff] }
  0x33   :  { %1532 = vmatprep.subr.bf16.mxu1 %v1531_v22  ;;  %1576 = vmatprep.subr.bf16.mxu0 %v1575_v23  ;;  %v1543_v49 = vpack.c.bf16 %v344_v47, %v343_v46  ;;  %v218_v52 = vld [vmem:[#allocation5 + $0x70] sm:$0xff]  ;;  %v1547_v53 = vpack.c.bf16 %v346_v51, %v345_v50  ;;  %v219_v54 = vld [vmem:[#allocation5 + $0x78] sm:$0xff]  ;;  %v347_v56 = vld [vmem:[#allocation5 + $0xc0] sm:$0xff] }
  0x34   :  { %v1595_v55 = vpack.c.bf16 %v219_v54, %v218_v52  ;;  %v348_v57 = vld [vmem:[#allocation5 + $0xc8] sm:$0xff]  ;;  %v349_v59 = vld [vmem:[#allocation5 + $0xd0] sm:$0xff]  ;;  %v350_v60 = vld [vmem:[#allocation5 + $0xd8] sm:$0xff] }
  0x35   :  { %1275 = vmatmul.mubr.msk.f32.gmra.mrb[2].mxu1 %vm66_vm0, %v1864_v28  ;;  %1578 = vmatpush3.bf16.msra.mxu0 %v1575_v23  ;;  %v1551_v58 = vpack.c.bf16 %v348_v57, %v347_v56  ;;  %v1555_v61 = vpack.c.bf16 %v350_v60, %v349_v59  ;;  %v351_v62 = vld [vmem:[#allocation5 + $0xe0] sm:$0xff]  ;;  %v352_v63 = vld [vmem:[#allocation5 + $0xe8] sm:$0xff]  ;;  %v353_v1 = vld [vmem:[#allocation5 + $0xf0] sm:$0xff] }
  0x36   :  { %1277 = vmatprep.mubr.msk.f32.mxu1 %vm66_vm0, %v1869_v29  ;;  %1534 = vmatpush3.bf16.msra.mxu1 %v1531_v22  ;;  %v1559_v0 = vpack.c.bf16 %v352_v63, %v351_v62  ;;  %v354_v2 = vld [vmem:[#allocation5 + $0xf8] sm:$0xff]  ;;  %v566_v4 = vld [vmem:[#allocation2 + $0x40] sm:$0xff]  ;;  %v567_v6 = vld [vmem:[#allocation2 + $0x48] sm:$0xff] }
  0x37   :  { %1536 = vmatprep.subr.bf16.mxu1 %v1535_v30  ;;  %1580 = vmatprep.subr.bf16.mxu0 %v1579_v31  ;;  %v1563_v3 = vpack.c.bf16 %v354_v2, %v353_v1  ;;  %v1912_v7 = vpack.c.bf16 %v567_v6, %v566_v4  ;;  %v684_v8 = vld [vmem:[#allocation5 + $0x100] sm:$0xff]  ;;  %v685_v9 = vld [vmem:[#allocation5 + $0x108] sm:$0xff]  ;;  %v686_v14 = vld [vmem:[#allocation5 + $0x110] sm:$0xff] }
  0x38   :  { %v1607_v10 = vpack.c.bf16 %v685_v9, %v684_v8  ;;  %v1918_v11 = vld [vmem:[%s2059_s0] sm:$0xff]  ;;  %v1923_v12 = vld [vmem:[%s2059_s0 + $0x8] sm:$0xff]  ;;  %v687_v15 = vld [vmem:[#allocation5 + $0x118] sm:$0xff] }
  0x39   :  { %1278 = vmatmul.mubr.msk.f32.gmra.mrb[4].mxu1 %vm66_vm0, %v1878_v34  ;;  %1582 = vmatpush3.bf16.msra.mxu0 %v1579_v31  ;;  %v1930_v19 = vld [vmem:[%s2059_s0 + $0x10] sm:$0xff]  ;;  %v1611_v22 = vpack.c.bf16 %v687_v15, %v686_v14  ;;  %v1935_v23 = vld [vmem:[%s2059_s0 + $0x18] sm:$0xff]  ;;  %v688_v25 = vld [vmem:[#allocation5 + $0x120] sm:$0xff] }
  0x3a   :  { %1280 = vmatprep.mubr.msk.f32.mxu1 %vm66_vm0, %v1883_v35  ;;  %1584 = vmatprep.subr.bf16.mxu0 %v1583_v36  ;;  %v689_v26 = vld [vmem:[#allocation5 + $0x128] sm:$0xff]  ;;  %v1942_v32 = vld [vmem:[%s2059_s0 + $0x20] sm:$0xff]  ;;  %v1959_v43 = vld [vmem:[%s2059_s0 + $0x38] sm:$0xff] }
  0x3b   :  { %v1615_v33 = vpack.c.bf16 %v689_v26, %v688_v25  ;;  %v569_v50 = vld [vmem:[#allocation2 + $0x58] sm:$0xff]  ;;  %v814_v56 = vld [vmem:[#allocation2 + $0x60] sm:$0xff]  ;;  %v815_v57 = vld [vmem:[#allocation2 + $0x68] sm:$0xff] }
  0x3c   :  { %v817_v8 = vld [vmem:[#allocation2 + $0x78] sm:$0xff] }
  0x3d   :  { %1281 = vmatmul.mubr.msk.f32.gmra.mrb[6].mxu1 %vm66_vm0, %v1892_v39  ;;  %1586 = vmatpush3.bf16.msra.mxu0 %v1583_v36  ;;  %v1947_v36 = vld [vmem:[%s2059_s0 + $0x28] sm:$0xff]  ;;  %v695_v14 = vld [vmem:[#allocation5 + $0x158] sm:$0xff] }
  0x3e   :  { %1291 = vmatprep.mubr.msk.f32.mxu1 %vm66_vm0, %v1843_v5  ;;  %1588 = vmatprep.subr.bf16.mxu0 %v1587_v42 }
  0x41   :  { %1292 = vmatmul.mubr.msk.f32.vlgmr.msra.gmra.mrb[8].mxu1 %vm66_vm0, %v1850_v20  ;;  %1590 = vmatpush3.bf16.msra.mxu0 %v1587_v42  ;;  %v1954_v42 = vld [vmem:[%s2059_s0 + $0x30] sm:$0xff]  ;;  %s1784_s0 = smov [#allocation7]  }
  0x42   :  { %1294 = vmatprep.mubr.msk.f32.mxu1 %vm66_vm0, %v1855_v21  ;;  %1538 = vmatpush3.bf16.msra.mxu1 %v1535_v30  ;;  %s1074_s18 = sshll.u32 %s1784_s0, 4  ;;  %s1075_s18 = int_to_ptr.vmem [resolvable:$true] %s1074_s18 }
  0x43   :  { %1540 = vmatprep.subr.bf16.mxu1 %v1539_v45  ;;  %1592 = vmatprep.subr.bf16.mxu0 %v1591_v48  ;;  %s1752_s19 = scalar_lea.vmem %s1075_s18, 1024  ;;  %p1757_p3 = scmp.lt.s32.totalorder %s1075_s18, %s1075_s18 }
  0x44   :  { %p1753_p2 = scmp.ne.s32.totalorder %s1075_s18, %s1752_s19  ;;  %p1758_p4 = scmp.lt.s32.totalorder %s1752_s19, %s1752_s19 }
  0x45   :  { %1295 = vmatmul.mubr.msk.f32.gmra.mrb[10].mxu1 %vm66_vm0, %v1864_v28  ;;  %1594 = vmatpush3.bf16.msra.mxu0 %v1591_v48 }
  0x46   :  { %1297 = vmatprep.mubr.msk.f32.mxu1 %vm66_vm0, %v1869_v29  ;;  %1542 = vmatpush3.bf16.msra.mxu1 %v1539_v45  ;;  %p1759_p5 = por %p1758_p4, %p1757_p3 }
  0x47   :  { %1544 = vmatprep.subr.bf16.mxu1 %v1543_v49  ;;  %1596 = vmatprep.subr.bf16.mxu0 %v1595_v55 }
  0x48   :  { %p1760_p6 = pnand %p1759_p5, %p1753_p2 }
  0x49   :  { %1298 = vmatmul.mubr.msk.f32.gmra.mrb[12].mxu1 %vm66_vm0, %v1878_v34  ;;  %1598 = vmatpush3.bf16.msra.mxu0 %v1595_v55 }
  0x4a   :  { %1300 = vmatprep.mubr.msk.f32.mxu1 %vm66_vm0, %v1883_v35  ;;  %1546 = vmatpush3.bf16.msra.mxu1 %v1543_v49  ;;  %v568_v49 = vld [vmem:[#allocation2 + $0x50] sm:$0xff] }
  0x4b   :  { %1548 = vmatprep.subr.bf16.mxu1 %v1547_v53  ;;  %1608 = vmatprep.subr.bf16.mxu0 %v1607_v10  ;;  %v1603_v54 = vpack.c.bf16 %v569_v50, %v568_v49  ;;  %v936_v50 = vld [vmem:[#allocation5 + $0x1a0] sm:$0xff] }
  0x4d   :  { %1301 = vmatmul.mubr.msk.f32.gmra.mrb[14].mxu1 %vm66_vm0, %v1892_v39 }
  0x4e   :  { %1550 = vmatpush3.bf16.msra.mxu1 %v1547_v53 }
  0x4f   :  { %1552 = vmatprep.subr.bf16.mxu1 %v1551_v58 }
  0x52   :  { %1554 = vmatpush3.bf16.msra.mxu1 %v1551_v58 }
  0x53   :  { %1556 = vmatprep.subr.bf16.mxu1 %v1555_v61 }
  0x56   :  { %1558 = vmatpush3.bf16.msra.mxu1 %v1555_v61  ;;  %v1639_v61 = vpack.c.bf16 %v815_v57, %v814_v56  ;;  %v938_v57 = vld [vmem:[#allocation5 + $0x1b0] sm:$0xff] }
  0x57   :  { %1560 = vmatprep.subr.bf16.mxu1 %v1559_v0 }
  0x5a   :  { %1562 = vmatpush3.bf16.msra.mxu1 %v1559_v0 }
  0x5b   :  { %1564 = vmatprep.subr.bf16.mxu1 %v1563_v3 }
  0x5e   :  { %1566 = vmatpush3.bf16.msra.mxu1 %v1563_v3 }
  0x5f   :  { %1600 = vmatprep.subr.bf16.mxu1 %v1912_v7 }
 0x104   :  { %v1273_v13 = vpop.f32.mrb[0].mxu1 }
 0x105   :  { %v157_v16 = vpop.f32.mrb[1].mxu1  ;;  %v197_v18 = vmul.f32 %v1273_v13, %v1923_v12  ;;  %v693_v13 = vld [vmem:[#allocation5 + $0x148] sm:$0xff] }
 0x106   :  { %v196_v17 = vmul.f32 %v157_v16, %v1918_v11 }
 0x108   :  { %v1276_v24 = vpop.f32.mrb[2].mxu1  ;;  %1379 = vmatprep.mubr.f32.mxu0 %v196_v17  ;;  %v699_v17 = vld [vmem:[#allocation5 + $0x178] sm:$0xff] }
 0x109   :  { %v167_v27 = vpop.f32.mrb[3].mxu1  ;;  %1380 = vmatmul.mubr.f32.vlgmr.msra.gmra.mrb[0].mxu0 %v197_v18  ;;  %v199_v31 = vmul.f32 %v1276_v24, %v1935_v23  ;;  %v933_v24 = vld [vmem:[#allocation5 + $0x188] sm:$0xff] }
 0x10a   :  { %v198_v30 = vmul.f32 %v167_v27, %v1930_v19  ;;  %1610 = vmatpush3.bf16.msra.mxu0 %v1607_v10 }
 0x10b   :  { %1612 = vmatprep.subr.bf16.mxu0 %v1611_v22 }
 0x10c   :  { %v1279_v37 = vpop.f32.mrb[4].mxu1  ;;  %1382 = vmatprep.mubr.f32.mxu0 %v198_v30 }
 0x10d   :  { %v177_v38 = vpop.f32.mrb[5].mxu1  ;;  %1383 = vmatmul.mubr.f32.gmra.mrb[2].mxu0 %v199_v31  ;;  %v201_v41 = vmul.f32 %v1279_v37, %v1947_v36 }
 0x10e   :  { %v200_v40 = vmul.f32 %v177_v38, %v1942_v32  ;;  %1614 = vmatpush3.bf16.msra.mxu0 %v1611_v22  ;;  %v932_v22 = vld [vmem:[#allocation5 + $0x180] sm:$0xff] }
 0x10f   :  { %1616 = vmatprep.subr.bf16.mxu0 %v1615_v33  ;;  %v1647_v25 = vpack.c.bf16 %v933_v24, %v932_v22 }
 0x110   :  { %v1282_v44 = vpop.f32.mrb[6].mxu1  ;;  %1385 = vmatprep.mubr.f32.mxu0 %v200_v40 }
 0x111   :  { %v187_v45 = vpop.f32.mrb[7].mxu1  ;;  %1386 = vmatmul.mubr.f32.gmra.mrb[4].mxu0 %v201_v41  ;;  %v203_v47 = vmul.f32 %v1282_v44, %v1959_v43  ;;  %v934_v44 = vld [vmem:[#allocation5 + $0x190] sm:$0xff] }
 0x112   :  { %v202_v46 = vmul.f32 %v187_v45, %v1954_v42  ;;  %1618 = vmatpush3.bf16.msra.mxu0 %v1615_v33  ;;  %v935_v45 = vld [vmem:[#allocation5 + $0x198] sm:$0xff] }
 0x113   :  { %v1651_v49 = vpack.c.bf16 %v935_v45, %v934_v44 }
 0x114   :  { %v1293_v48 = vpop.f32.mrb[8].mxu1  ;;  %1388 = vmatprep.mubr.f32.mxu0 %v202_v46 }
 0x115   :  { %v291_v51 = vpop.f32.mrb[9].mxu1  ;;  %1389 = vmatmul.mubr.f32.gmra.mrb[6].mxu0 %v203_v47  ;;  %v331_v53 = vmul.f32 %v1293_v48, %v1923_v12 }
 0x116   :  { %v330_v52 = vmul.f32 %v291_v51, %v1918_v11  ;;  %v937_v51 = vld [vmem:[#allocation5 + $0x1a8] sm:$0xff] }
 0x117   :  { %v1655_v56 = vpack.c.bf16 %v937_v51, %v936_v50 }
 0x118   :  { %v1296_v55 = vpop.f32.mrb[10].mxu1  ;;  %1335 = vmatprep.mubr.f32.mxu1 %v330_v52 }
 0x119   :  { %v301_v58 = vpop.f32.mrb[11].mxu1  ;;  %1336 = vmatmul.mubr.f32.vlgmr.msra.gmra.mrb[16].mxu1 %v331_v53  ;;  %v333_v60 = vmul.f32 %v1296_v55, %v1935_v23 }
 0x11a   :  { %v332_v59 = vmul.f32 %v301_v58, %v1930_v19  ;;  %1602 = vmatpush3.bf16.msra.mxu1 %v1912_v7  ;;  %v816_v7 = vld [vmem:[#allocation2 + $0x70] sm:$0xff]  ;;  %v939_v58 = vld [vmem:[#allocation5 + $0x1b8] sm:$0xff] }
 0x11b   :  { %1604 = vmatprep.subr.bf16.mxu1 %v1603_v54  ;;  %v1643_v9 = vpack.c.bf16 %v817_v8, %v816_v7  ;;  %v942_v8 = vld [vmem:[#allocation5 + $0x1d0] sm:$0xff] }
 0x11c   :  { %v1299_v62 = vpop.f32.mrb[12].mxu1  ;;  %1338 = vmatprep.mubr.f32.mxu1 %v332_v59 }
 0x11d   :  { %v311_v63 = vpop.f32.mrb[13].mxu1  ;;  %1339 = vmatmul.mubr.f32.gmra.mrb[18].mxu1 %v333_v60  ;;  %v335_v1 = vmul.f32 %v1299_v62, %v1947_v36 }
 0x11e   :  { %v334_v0 = vmul.f32 %v311_v63, %v1942_v32  ;;  %1606 = vmatpush3.bf16.msra.mxu1 %v1603_v54  ;;  %v1659_v63 = vpack.c.bf16 %v939_v58, %v938_v57 }
 0x11f   :  { %1640 = vmatprep.subr.bf16.mxu1 %v1639_v61 }
 0x120   :  { %v1302_v2 = vpop.f32.mrb[14].mxu1  ;;  %1341 = vmatprep.mubr.f32.mxu1 %v334_v0  ;;  %v940_v0 = vld [vmem:[#allocation5 + $0x1c0] sm:$0xff] }
 0x121   :  { %v321_v3 = vpop.f32.mrb[15].mxu1  ;;  %1342 = vmatmul.mubr.f32.gmra.mrb[20].mxu1 %v335_v1  ;;  %v337_v6 = vmul.f32 %v1302_v2, %v1959_v43  ;;  %v941_v1 = vld [vmem:[#allocation5 + $0x1c8] sm:$0xff] }
 0x122   :  { %v336_v4 = vmul.f32 %v321_v3, %v1954_v42  ;;  %v1663_v7 = vpack.c.bf16 %v941_v1, %v940_v0 }
 0x124   :  { %1344 = vmatprep.mubr.f32.mxu1 %v336_v4 }
 0x125   :  { %1345 = vmatmul.mubr.f32.gmra.mrb[22].mxu1 %v337_v6 }
 0x126   :  { %1399 = vmatprep.mubr.msk.f32.mxu1 %vm66_vm0, %v1843_v5 }
 0x129   :  { %1400 = vmatmul.mubr.msk.f32.vlgmr.msra.gmra.mrb[24].mxu1 %vm66_vm0, %v1850_v20 }
 0x12a   :  { %1642 = vmatpush3.bf16.msra.mxu1 %v1639_v61  ;;  %1402 = vmatprep.mubr.msk.f32.mxu1 %vm66_vm0, %v1855_v21 }
 0x12b   :  { %1644 = vmatprep.subr.bf16.mxu1 %v1643_v9 }
 0x12d   :  { %1403 = vmatmul.mubr.msk.f32.gmra.mrb[26].mxu1 %vm66_vm0, %v1864_v28 }
 0x12e   :  { %1405 = vmatprep.mubr.msk.f32.mxu1 %vm66_vm0, %v1869_v29  ;;  %1646 = vmatpush3.bf16.msra.mxu1 %v1643_v9  ;;  %v943_v9 = vld [vmem:[#allocation5 + $0x1d8] sm:$0xff] }
 0x131   :  { %1406 = vmatmul.mubr.msk.f32.gmra.mrb[28].mxu1 %vm66_vm0, %v1878_v34 }
 0x132   :  { %1408 = vmatprep.mubr.msk.f32.mxu1 %vm66_vm0, %v1883_v35 }
 0x135   :  { %1409 = vmatmul.mubr.msk.f32.gmra.mrb[30].mxu1 %vm66_vm0, %v1892_v39 }
 0x136   :  { %1463 = vmatprep.mubr.msk.f32.mxu1 %vm66_vm0, %v1843_v5  ;;  %v690_v5 = vld [vmem:[#allocation5 + $0x130] sm:$0xff] }
 0x139   :  { %1464 = vmatmul.mubr.msk.f32.vlgmr.msra.gmra.mrb[32].mxu1 %vm66_vm0, %v1850_v20  ;;  %v691_v20 = vld [vmem:[#allocation5 + $0x138] sm:$0xff] }
 0x13a   :  { %1466 = vmatprep.mubr.msk.f32.mxu1 %vm66_vm0, %v1855_v21  ;;  %v1619_v10 = vpack.c.bf16 %v691_v20, %v690_v5  ;;  %v692_v21 = vld [vmem:[#allocation5 + $0x140] sm:$0xff] }
 0x13c   :  { %1620 = vmatprep.subr.bf16.mxu0 %v1619_v10 }
 0x13d   :  { %1467 = vmatmul.mubr.msk.f32.gmra.mrb[34].mxu1 %vm66_vm0, %v1864_v28  ;;  %1622 = vmatpush3.bf16.msra.mxu0 %v1619_v10  ;;  %v1623_v28 = vpack.c.bf16 %v693_v13, %v692_v21  ;;  %v1667_v21 = vpack.c.bf16 %v943_v9, %v942_v8  ;;  %v944_v13 = vld [vmem:[#allocation5 + $0x1e0] sm:$0xff] }
 0x13e   :  { %1469 = vmatprep.mubr.msk.f32.mxu1 %vm66_vm0, %v1869_v29  ;;  %v694_v29 = vld [vmem:[#allocation5 + $0x150] sm:$0xff] }
 0x13f   :  { %1624 = vmatprep.subr.bf16.mxu0 %v1623_v28  ;;  %v1627_v15 = vpack.c.bf16 %v695_v14, %v694_v29 }
 0x141   :  { %1470 = vmatmul.mubr.msk.f32.gmra.mrb[36].mxu1 %vm66_vm0, %v1878_v34  ;;  %1626 = vmatpush3.bf16.msra.mxu0 %v1623_v28  ;;  %v696_v34 = vld [vmem:[#allocation5 + $0x160] sm:$0xff]  ;;  %v945_v28 = vld [vmem:[#allocation5 + $0x1e8] sm:$0xff] }
 0x142   :  { %1472 = vmatprep.mubr.msk.f32.mxu1 %vm66_vm0, %v1883_v35  ;;  %1628 = vmatprep.subr.bf16.mxu0 %v1627_v15  ;;  %v697_v35 = vld [vmem:[#allocation5 + $0x168] sm:$0xff] }
 0x143   :  { %v1631_v16 = vpack.c.bf16 %v697_v35, %v696_v34  ;;  %v946_v34 = vld [vmem:[#allocation5 + $0x1f0] sm:$0xff]  ;;  %v947_v35 = vld [vmem:[#allocation5 + $0x1f8] sm:$0xff] }
 0x145   :  { %1473 = vmatmul.mubr.msk.f32.gmra.mrb[38].mxu1 %vm66_vm0, %v1892_v39  ;;  %1630 = vmatpush3.bf16.msra.mxu0 %v1627_v15  ;;  %v698_v39 = vld [vmem:[#allocation5 + $0x170] sm:$0xff]  ;;  %v1671_v15 = vpack.c.bf16 %v945_v28, %v944_v13 }
 0x146   :  { %1632 = vmatprep.subr.bf16.mxu0 %v1631_v16  ;;  %v1635_v18 = vpack.c.bf16 %v699_v17, %v698_v39  ;;  %v1675_v17 = vpack.c.bf16 %v947_v35, %v946_v34 }
 0x149   :  { %1634 = vmatpush3.bf16.msra.mxu0 %v1631_v16 }
 0x14a   :  { %1636 = vmatprep.subr.bf16.mxu0 %v1635_v18 }
 0x14d   :  { %1638 = vmatpush3.bf16.msra.mxu0 %v1635_v18 }
 0x14e   :  { %1648 = vmatprep.subr.bf16.mxu0 %v1647_v25 }
 0x1ec   :  { %v2004_v26 = vpop.f32.mrb[16].mxu1 }
 0x1ed   :  { %v2006_v27 = vpop.f32.mrb[17].mxu1 }
 0x1f0   :  { %v2008_v30 = vpop.f32.mrb[18].mxu1 }
 0x1f1   :  { %v2010_v31 = vpop.f32.mrb[19].mxu1 }
 0x1f4   :  { %v2012_v33 = vpop.f32.mrb[20].mxu1 }
 0x1f5   :  { %v2014_v37 = vpop.f32.mrb[21].mxu1 }
 0x1f8   :  { %v2016_v38 = vpop.f32.mrb[22].mxu1 }
 0x1f9   :  { %v2018_v40 = vpop.f32.mrb[23].mxu1 }
 0x1fc   :  { %v1401_v41 = vpop.f32.mrb[24].mxu1 }
 0x1fd   :  { %v636_v46 = vpop.f32.mrb[25].mxu1  ;;  %v676_v48 = vmul.f32 %v1401_v41, %v1923_v12 }
 0x1fe   :  { %v675_v47 = vmul.f32 %v636_v46, %v1918_v11 }
 0x200   :  { %1443 = vmatprep.mubr.f32.mxu0 %v675_v47  ;;  %v1404_v52 = vpop.f32.mrb[26].mxu1 }
 0x201   :  { %1444 = vmatmul.mubr.f32.vlgmr.msra.gmra.mrb[0].mxu0 %v676_v48  ;;  %v678_v53 = vmul.f32 %v1404_v52, %v1935_v23  ;;  %v646_v54 = vpop.f32.mrb[27].mxu1 }
 0x202   :  { %1650 = vmatpush3.bf16.msra.mxu0 %v1647_v25  ;;  %v677_v55 = vmul.f32 %v646_v54, %v1930_v19 }
 0x203   :  { %1652 = vmatprep.subr.bf16.mxu0 %v1651_v49 }
 0x204   :  { %v1407_v59 = vpop.f32.mrb[28].mxu1  ;;  %1446 = vmatprep.mubr.f32.mxu0 %v677_v55 }
 0x205   :  { %v680_v60 = vmul.f32 %v1407_v59, %v1947_v36  ;;  %v656_v61 = vpop.f32.mrb[29].mxu1  ;;  %1447 = vmatmul.mubr.f32.gmra.mrb[2].mxu0 %v678_v53 }
 0x206   :  { %1654 = vmatpush3.bf16.msra.mxu0 %v1651_v49  ;;  %v679_v62 = vmul.f32 %v656_v61, %v1942_v32 }
 0x207   :  { %1656 = vmatprep.subr.bf16.mxu0 %v1655_v56 }
 0x208   :  { %v1410_v2 = vpop.f32.mrb[30].mxu1  ;;  %1449 = vmatprep.mubr.f32.mxu0 %v679_v62 }
 0x209   :  { %v682_v3 = vmul.f32 %v1410_v2, %v1959_v43  ;;  %v666_v4 = vpop.f32.mrb[31].mxu1  ;;  %1450 = vmatmul.mubr.f32.gmra.mrb[4].mxu0 %v680_v60 }
 0x20a   :  { %1658 = vmatpush3.bf16.msra.mxu0 %v1655_v56  ;;  %v681_v6 = vmul.f32 %v666_v4, %v1954_v42 }
 0x20b   :  { %1660 = vmatprep.subr.bf16.mxu0 %v1659_v63 }
 0x20c   :  { %1452 = vmatprep.mubr.f32.mxu0 %v681_v6  ;;  %v1465_v5 = vpop.f32.mrb[32].mxu1 }
 0x20d   :  { %1453 = vmatmul.mubr.f32.gmra.mrb[6].mxu0 %v682_v3  ;;  %v884_v20 = vpop.f32.mrb[33].mxu1  ;;  %v924_v24 = vmul.f32 %v1465_v5, %v1923_v12 }
 0x20e   :  { %1662 = vmatpush3.bf16.msra.mxu0 %v1659_v63  ;;  %v923_v10 = vmul.f32 %v884_v20, %v1918_v11 }
 0x20f   :  { %1664 = vmatprep.subr.bf16.mxu0 %v1663_v7 }
 0x210   :  { %v1468_v29 = vpop.f32.mrb[34].mxu1  ;;  %1507 = vmatprep.mubr.f32.mxu0 %v923_v10 }
 0x211   :  { %v894_v14 = vpop.f32.mrb[35].mxu1  ;;  %v926_v41 = vmul.f32 %v1468_v29, %v1935_v23 }
 0x212   :  { %1666 = vmatpush3.bf16.msra.mxu0 %v1663_v7  ;;  %v925_v11 = vmul.f32 %v894_v14, %v1930_v19 }
 0x213   :  { %1668 = vmatprep.subr.bf16.mxu0 %v1667_v21 }
 0x214   :  { %v1471_v16 = vpop.f32.mrb[36].mxu1 }
 0x215   :  { %v904_v39 = vpop.f32.mrb[37].mxu1  ;;  %v928_v45 = vmul.f32 %v1471_v16, %v1947_v36 }
 0x216   :  { %1670 = vmatpush3.bf16.msra.mxu0 %v1667_v21  ;;  %v927_v25 = vmul.f32 %v904_v39, %v1942_v32 }
 0x217   :  { %1672 = vmatprep.subr.bf16.mxu0 %v1671_v15 }
 0x218   :  { %v1474_v18 = vpop.f32.mrb[38].mxu1 }
 0x219   :  { %v914_v22 = vpop.f32.mrb[39].mxu1  ;;  %v930_v46 = vmul.f32 %v1474_v18, %v1959_v43 }
 0x21a   :  { %1674 = vmatpush3.bf16.msra.mxu0 %v1671_v15  ;;  %v929_v44 = vmul.f32 %v914_v22, %v1954_v42 }
 0x21b   :  { %1676 = vmatprep.subr.bf16.mxu0 %v1675_v17 }
 0x21e   :  { %1678 = vmatpush3.bf16.msra.mxu0 %v1675_v17 }
 0x221   :  { %1508 = vmatmul.mubr.f32.vlgmr.msra.gmra.mrb[0].mxu0 %v924_v24 }
 0x222   :  { %1510 = vmatprep.mubr.f32.mxu0 %v925_v11 }
 0x225   :  { %1511 = vmatmul.mubr.f32.gmra.mrb[2].mxu0 %v926_v41 }
 0x226   :  { %1513 = vmatprep.mubr.f32.mxu0 %v927_v25 }
 0x229   :  { %1514 = vmatmul.mubr.f32.gmra.mrb[4].mxu0 %v928_v45 }
 0x22a   :  { %1516 = vmatprep.mubr.f32.mxu0 %v929_v44 }
 0x22d   :  { %1517 = vmatmul.mubr.f32.gmra.mrb[6].mxu0 %v930_v46 }
 0x2f4   :  { %v1509_v19 = vpop.f32.mrb[0].mxu0 }
 0x2f5   :  { %v1679_v12 = vadd.f32 %v1509_v19, %v2004_v26  ;;  %v1014_v47 = vpop.f32.mrb[1].mxu0 }
 0x2f6   :  { %v1680_v48 = vadd.f32 %v1014_v47, %v2006_v27 }
 0x2f7   :  { %1062 = vst [vmem:[#allocation7 + $0x8] sm:$0xff] %v1679_v12 }
 0x2f8   :  { %1061 = vst [vmem:[#allocation7] sm:$0xff] %v1680_v48  ;;  %v1512_v23 = vpop.f32.mrb[2].mxu0 }
 0x2f9   :  { %v1681_v32 = vadd.f32 %v1512_v23, %v2008_v30  ;;  %v1024_v49 = vpop.f32.mrb[3].mxu0 }
 0x2fa   :  { %v1682_v42 = vadd.f32 %v1024_v49, %v2010_v31 }
 0x2fb   :  { %1064 = vst [vmem:[#allocation7 + $0x18] sm:$0xff] %v1681_v32 }
 0x2fc   :  { %1063 = vst [vmem:[#allocation7 + $0x10] sm:$0xff] %v1682_v42  ;;  %v1515_v36 = vpop.f32.mrb[4].mxu0 }
 0x2fd   :  { %v1683_v43 = vadd.f32 %v1515_v36, %v2012_v33  ;;  %v1034_v50 = vpop.f32.mrb[5].mxu0 }
 0x2fe   :  { %v1684_v51 = vadd.f32 %v1034_v50, %v2014_v37 }
 0x2ff   :  { %1066 = vst [vmem:[#allocation7 + $0x28] sm:$0xff] %v1683_v43 }
 0x300   :  { %1065 = vst [vmem:[#allocation7 + $0x20] sm:$0xff] %v1684_v51  ;;  %v1518_v26 = vpop.f32.mrb[6].mxu0 }
 0x301   :  { %v1685_v27 = vadd.f32 %v1518_v26, %v2016_v38  ;;  %v1044_v52 = vpop.f32.mrb[7].mxu0 }
 0x302   :  { %v1686_v30 = vadd.f32 %v1044_v52, %v2018_v40 }
 0x303   :  { %1068 = vst [vmem:[#allocation7 + $0x38] sm:$0xff] %v1685_v27 }
 0x304   :  { %1067 = vst [vmem:[#allocation7 + $0x30] sm:$0xff] %v1686_v30 }
 0x305   :  { %1763 = shalt.err (!%p1760_p6)
}
 0x306   :  { %s1764_s22 = scalar_lea.hbm %s2063_s4, 1024 }
 0x307   :  { %p1765_p7 = scmp.ne.s32.totalorder %s2063_s4, %s1764_s22  ;;  %p1768_p8 = scmp.lt.u32.totalorder %s1764_s22, %s2063_s4 }
 0x309   :  { %p1770_p9 = pnand %p1768_p8, %p1765_p7 }
 0x30b   :  { %1773 = shalt.err (!%p1770_p9)
}
 0x30c   :  { %1080 = dma.vmem_to_hbm [thread:$0]  %s1075_s18, 1024, %s2063_s4, [#allocation4], %s1781_s25, %s1781_s25, %s1782_s26  }
 0x30d   :  { %1778 = dma.done.wait [#allocation4], 1024  }
 0x30e   :  { %1779 = vsyncadd [#allocation4], 4294966272 }
 0x30f   :  { %1084 = vsyncpa [#allocation3], 1 }
 0x310   :  { %1085 = vsyncpa [#allocation6], 1 }
 0x311   :  { %1086 = vsyncpa [#allocation4], 1 }

</bundles_post_ra>
